<compile_context>
chip_gen: v5e
topology: v5e:2x2
jax: 0.10.0
libtpu: 0.0.40
codegen_flags: <defaults>
</compile_context>

<pallas_src>
import math

import jax
import jax.numpy as jnp
from jax.experimental import pallas as pl
from jax.experimental.pallas import tpu as pltpu


def _pick_tile(n, cap):
    """Largest tile <= cap that divides n and keeps 8-sublane alignment."""
    if n <= cap:
        return n
    for t in range(cap, 7, -1):
        if n % t == 0 and t % 8 == 0:
            return t
    # TODO(synk): no 8-aligned divisor <= cap -> fall back to the full extent;
    # a masked ragged-seq path would be needed to avoid a seq-sized tile here.
    return n


def _tpu_vmem_capacity_bytes():
    """Physical VMEM per TensorCore; conservative fallback if unqueryable."""
    try:
        return int(pltpu.get_tpu_info().vmem_capacity_bytes)
    except Exception:
        return 64 * 1024 * 1024  # v7x per-TC VMEM (smallest of v5e/v6e/v7x)


# ---------------------------------------------------------------------------
# Pass 1: fused QKV projection (computed once per token, scale folded into Q)
# ---------------------------------------------------------------------------
def _proj_kernel(scale):
    def kernel(x_ref, wq_ref, wk_ref, wv_ref, q_ref, k_ref, v_ref):
        x = x_ref[0]                                              # (ts, dim_in), mxu_dtype
        q = jnp.dot(x, wq_ref[...], preferred_element_type=jnp.float32)
        k = jnp.dot(x, wk_ref[...], preferred_element_type=jnp.float32)
        v = jnp.dot(x, wv_ref[...], preferred_element_type=jnp.float32)
        q_ref[0] = (q * scale).astype(q_ref.dtype)   # fold 1/sqrt(dk) into q
        k_ref[0] = k.astype(k_ref.dtype)
        v_ref[0] = v.astype(v_ref.dtype)
    return kernel


# ---------------------------------------------------------------------------
# Pass 2: flash attention over pre-projected, pre-scaled q/k/v
# ---------------------------------------------------------------------------
def _flash_kernel(nh, dk, dv, mxu_dtype, approx_recip):
    def kernel(q_ref, k_ref, v_ref, o_ref, m_scr, l_scr, acc_scr):
        ki = pl.program_id(2)
        nk = pl.num_programs(2)

        @pl.when(ki == 0)
        def _():
            m_scr[...] = jnp.full_like(m_scr, -jnp.inf)
            l_scr[...] = jnp.zeros_like(l_scr)
            acc_scr[...] = jnp.zeros_like(acc_scr)

        contract_last = (((1,), (1,)), ((), ()))   # q @ k^T without a k transpose
        for h in range(nh):
            qh = q_ref[0, :, h * dk:(h + 1) * dk]                 # (tq, dk)  mxu_dtype
            kh = k_ref[0, :, h * dk:(h + 1) * dk]                 # (tkv, dk) mxu_dtype
            vh = v_ref[0, :, h * dv:(h + 1) * dv]                 # (tkv, dv) mxu_dtype

            s = jax.lax.dot_general(qh, kh, contract_last,
                                    preferred_element_type=jnp.float32)  # (tq, tkv)

            m_p = m_scr[:, h:h + 1]                               # (tq, 1)
            m_h = jnp.maximum(m_p, jnp.max(s, axis=-1, keepdims=True))
            alpha = jnp.exp(m_p - m_h)                            # (tq, 1)
            p = jnp.exp(s - m_h)                                  # (tq, tkv) f32

            # In-place per-head slice updates: bound live ranges to one head,
            # no list + concatenate, no full-width acc read/rewrite.
            l_scr[:, h:h + 1] = alpha * l_scr[:, h:h + 1] + jnp.sum(
                p, axis=-1, keepdims=True)
            acc_scr[:, h * dv:(h + 1) * dv] = (
                alpha * acc_scr[:, h * dv:(h + 1) * dv]
                + jnp.dot(p.astype(mxu_dtype), vh,
                          preferred_element_type=jnp.float32))
            m_scr[:, h:h + 1] = m_h

        @pl.when(ki == nk - 1)
        def _():
            # Normalize and store head-by-head (low epilogue vreg pressure;
            # lane-dense stores whenever dv % 128 == 0).
            for h in range(nh):
                inv_l = pl.reciprocal(l_scr[:, h:h + 1], approx=approx_recip)
                o_ref[0, :, h * dv:(h + 1) * dv] = (
                    acc_scr[:, h * dv:(h + 1) * dv] * inv_l).astype(o_ref.dtype)

    return kernel


def multi_head_self_attention(x, wq, wk, wv, num_heads, *,
                              mxu_dtype=jnp.bfloat16,
                              q_tile=None, kv_tile=None, proj_tile=None,
                              approx_reciprocal=True):
    """x: (batch, seq, dim_in); wq/wk: (dim_k, dim_in); wv: (dim_v, dim_in)
    (PyTorch nn.Linear weight layout, bias=False).  Returns (batch, seq, dim_v)
    in x.dtype.

    mxu_dtype: dtype fed to the MXU (default bf16 = fast path on v5e/v6e/v7x);
               accumulation and all softmax math stay in float32.  Pass
               jnp.float32 for strict parity with the PyTorch module.
    """
    batch, seq, dim_in = x.shape
    dim_k = wq.shape[0]
    dim_v = wv.shape[0]
    nh = num_heads
    assert dim_k % nh == 0 and dim_v % nh == 0, \
        "dim_k and dim_v must be multiples of num_heads"
    assert wq.shape == (dim_k, dim_in) and wk.shape == (dim_k, dim_in)
    assert wv.shape == (dim_v, dim_in)
    dk = dim_k // nh
    dv = dim_v // nh
    scale = 1.0 / math.sqrt(dk)

    # ---- generation-adaptive tiles & VMEM budget ----
    vmem_cap = _tpu_vmem_capacity_bytes()
    big_vmem = vmem_cap >= 96 * 1024 * 1024          # v5e/v6e: 128 MiB; v7x: 64 MiB
    # Leave headroom below physical capacity (critical on v7x's 64 MiB / TC).
    vmem_limit = max(32 * 1024 * 1024,
                     min(int(vmem_cap * 0.85), 110 * 1024 * 1024))
    if q_tile is None:
        q_tile = 512 if big_vmem else 256
    if kv_tile is None:
        kv_tile = 1024 if big_vmem else 384
    if proj_tile is None:
        proj_tile = 512 if big_vmem else 256

    tq = _pick_tile(seq, q_tile)
    tkv = _pick_tile(seq, kv_tile)
    ts = _pick_tile(seq, proj_tile)

    mxu_itemsize = jnp.dtype(mxu_dtype).itemsize
    out_itemsize = jnp.dtype(x.dtype).itemsize

    # nn.Linear computes x @ W.T; pre-transpose AND pre-cast once in the
    # wrapper so no weight casts happen inside the kernels.
    wq_t = wq.T.astype(mxu_dtype)
    wk_t = wk.T.astype(mxu_dtype)
    wv_t = wv.T.astype(mxu_dtype)
    x_cast = x.astype(mxu_dtype)

    # ---------------- Pass 1: QKV projection ----------------
    proj_cost = pl.CostEstimate(
        flops=2 * batch * seq * dim_in * (2 * dim_k + dim_v),
        transcendentals=0,
        bytes_accessed=mxu_itemsize * (batch * seq * dim_in
                                       + dim_in * (2 * dim_k + dim_v)
                                       + batch * seq * (2 * dim_k + dim_v)),
    )
    # Weight BlockSpecs use a constant index map -> DMA'd once, resident in
    # VMEM for the whole projection grid.
    # TODO(synk): on v7x, verify constant-index weight inputs are
    # single-buffered (pipeline_mode=pl.Buffered(1)) to halve weight residency.
    q_proj, k_proj, v_proj = pl.pallas_call(
        _proj_kernel(scale),
        out_shape=(jax.ShapeDtypeStruct((batch, seq, dim_k), mxu_dtype),
                   jax.ShapeDtypeStruct((batch, seq, dim_k), mxu_dtype),
                   jax.ShapeDtypeStruct((batch, seq, dim_v), mxu_dtype)),
        grid_spec=pltpu.PrefetchScalarGridSpec(
            num_scalar_prefetch=0,
            grid=(batch, seq // ts),
            in_specs=[
                pl.BlockSpec((1, ts, dim_in), lambda b, si: (b, si, 0)),
                pl.BlockSpec((dim_in, dim_k), lambda b, si: (0, 0)),
                pl.BlockSpec((dim_in, dim_k), lambda b, si: (0, 0)),
                pl.BlockSpec((dim_in, dim_v), lambda b, si: (0, 0)),
            ],
            out_specs=[
                pl.BlockSpec((1, ts, dim_k), lambda b, si: (b, si, 0)),
                pl.BlockSpec((1, ts, dim_k), lambda b, si: (b, si, 0)),
                pl.BlockSpec((1, ts, dim_v), lambda b, si: (b, si, 0)),
            ],
        ),
        compiler_params=pltpu.CompilerParams(
            dimension_semantics=("parallel", "parallel"),
            vmem_limit_bytes=vmem_limit,
        ),
        cost_estimate=proj_cost,
    )(x_cast, wq_t, wk_t, wv_t)

    # ---------------- Pass 2: flash attention ----------------
    grid = (batch, seq // tq, seq // tkv)
    q_tiles = seq // tq
    flash_cost = pl.CostEstimate(
        flops=2 * batch * seq * seq * (dim_k + dim_v),
        transcendentals=batch * nh * seq * seq,
        bytes_accessed=(mxu_itemsize * (batch * seq * dim_k
                                        + batch * q_tiles * seq * (dim_k + dim_v))
                        + out_itemsize * batch * seq * dim_v),
    )

    out = pl.pallas_call(
        _flash_kernel(nh, dk, dv, mxu_dtype, approx_reciprocal),
        out_shape=jax.ShapeDtypeStruct((batch, seq, dim_v), x.dtype),
        grid_spec=pltpu.PrefetchScalarGridSpec(
            num_scalar_prefetch=0,
            grid=grid,
            in_specs=[
                # Q tile: constant across the kv axis -> stays VMEM-resident.
                pl.BlockSpec((1, tq, dim_k), lambda b, qi, ki: (b, qi, 0)),
                pl.BlockSpec((1, tkv, dim_k), lambda b, qi, ki: (b, ki, 0)),
                pl.BlockSpec((1, tkv, dim_v), lambda b, qi, ki: (b, ki, 0)),
            ],
            out_specs=pl.BlockSpec((1, tq, dim_v), lambda b, qi, ki: (b, qi, 0)),
            scratch_shapes=[
                pltpu.VMEM((tq, nh), jnp.float32),      # running max m (per head)
                pltpu.VMEM((tq, nh), jnp.float32),      # running sum l (per head)
                pltpu.VMEM((tq, dim_v), jnp.float32),   # fused f32 output accumulator
            ],
        ),
        compiler_params=pltpu.CompilerParams(
            dimension_semantics=("parallel", "parallel", "arbitrary"),
            vmem_limit_bytes=vmem_limit,
        ),
        cost_estimate=flash_cost,
    )(q_proj, k_proj, v_proj)

    # Output already (batch, seq, dim_v) -- no wrapper transpose needed.
    return out


def _reference(x, wq, wk, wv, num_heads):
    """Pure-JAX mirror of the PyTorch forward for validation."""
    batch, seq, dim_in = x.shape
    nh = num_heads
    dk = wq.shape[0] // nh
    dv = wv.shape[0] // nh
    q = (x @ wq.T).reshape(batch, seq, nh, dk).transpose(0, 2, 1, 3)
    k = (x @ wk.T).reshape(batch, seq, nh, dk).transpose(0, 2, 1, 3)
    v = (x @ wv.T).reshape(batch, seq, nh, dv).transpose(0, 2, 1, 3)
    dist = jnp.einsum("bhqd,bhkd->bhqk", q, k) / math.sqrt(dk)
    dist = jax.nn.softmax(dist, axis=-1)
    att = jnp.einsum("bhqk,bhkd->bhqd", dist, v)
    return att.transpose(0, 2, 1, 3).reshape(batch, seq, nh * dv)


if __name__ == "__main__":
    # Small config consistent with the module's forward pass shapes.
    batch, seq = 2, 8
    dim_in, dim_k, dim_v, num_heads = 32, 32, 32, 4

    key = jax.random.PRNGKey(0)
    kx, kq, kk, kv = jax.random.split(key, 4)

    x = jax.random.normal(kx, (batch, seq, dim_in), dtype=jnp.float32)
    # nn.Linear(dim_in, dim_out, bias=False) weights: shape (dim_out, dim_in)
    wq = jax.random.normal(kq, (dim_k, dim_in), dtype=jnp.float32) * 0.1
    wk = jax.random.normal(kk, (dim_k, dim_in), dtype=jnp.float32) * 0.1
    wv = jax.random.normal(kv, (dim_v, dim_in), dtype=jnp.float32) * 0.1

    ref = _reference(x, wq, wk, wv, num_heads)

    # f32 MXU path — strict parity with the PyTorch module's default precision.
    out_f32 = multi_head_self_attention(x, wq, wk, wv, num_heads,
                                        mxu_dtype=jnp.float32)
    out_f32 = jax.block_until_ready(out_f32)
    assert out_f32.shape == (batch, seq, dim_v)
    assert jnp.allclose(out_f32, ref, atol=2e-3, rtol=2e-3), \
        "f32 kernel mismatch vs reference"

    # Default path: bf16 MXU inputs / f32 accumulation (fast MXU on v5e/v6e/v7x).
    out_bf16 = multi_head_self_attention(x, wq, wk, wv, num_heads)
    out_bf16 = jax.block_until_ready(out_bf16)
    assert out_bf16.shape == (batch, seq, dim_v)
    assert jnp.allclose(out_bf16, ref, atol=7e-2, rtol=7e-2), \
        "bf16 kernel mismatch vs reference"

    print("KERNEL_OK")
</pallas_src>

<mosaic_0001>
module attributes {stable_mosaic.version = 11 : i64} {
  func.func @kernel(%arg0: i32, %arg1: i32, %arg2: memref<1x8x32xf32, #tpu.memory_space<vmem>>, %arg3: memref<32x32xf32, #tpu.memory_space<vmem>>, %arg4: memref<32x32xf32, #tpu.memory_space<vmem>>, %arg5: memref<32x32xf32, #tpu.memory_space<vmem>>, %arg6: memref<1x8x32xf32, #tpu.memory_space<vmem>>, %arg7: memref<1x8x32xf32, #tpu.memory_space<vmem>>, %arg8: memref<1x8x32xf32, #tpu.memory_space<vmem>>) attributes {dimension_semantics = [#tpu.dimension_semantics<parallel>, #tpu.dimension_semantics<parallel>], iteration_bounds = array<i64: 2, 1>, scalar_prefetch = 0 : i64, scratch_operands = 0 : i64, tpu.core_type = #tpu.core_type<tc>, window_params = [{transform_indices = @transform_0, window_bounds = array<i64: 1, 8, 32>}, {pipeline_mode = #tpu.pipeline_mode<synchronous>, transform_indices = @transform_1, window_bounds = array<i64: 32, 32>}, {pipeline_mode = #tpu.pipeline_mode<synchronous>, transform_indices = @transform_2, window_bounds = array<i64: 32, 32>}, {pipeline_mode = #tpu.pipeline_mode<synchronous>, transform_indices = @transform_3, window_bounds = array<i64: 32, 32>}, {transform_indices = @transform_4, window_bounds = array<i64: 1, 8, 32>}, {transform_indices = @transform_5, window_bounds = array<i64: 1, 8, 32>}, {transform_indices = @transform_6, window_bounds = array<i64: 1, 8, 32>}]} {
    %c0 = arith.constant 0 : index
    %c0_0 = arith.constant 0 : index
    %c0_1 = arith.constant 0 : index
    %0 = vector.load %arg2[%c0, %c0_0, %c0_1] : memref<1x8x32xf32, #tpu.memory_space<vmem>>, vector<1x8x32xf32>
    %1 = vector.shape_cast %0 : vector<1x8x32xf32> to vector<8x32xf32>
    %c0_2 = arith.constant 0 : index
    %c0_3 = arith.constant 0 : index
    %2 = vector.load %arg3[%c0_2, %c0_3] : memref<32x32xf32, #tpu.memory_space<vmem>>, vector<32x32xf32>
    %cst = arith.constant dense<0.000000e+00> : vector<8x32xf32>
    %3 = tpu.matmul %1, %2, %cst {dimension_numbers = #tpu.dot_dimension_numbers<[1], [0], [0], [1], [0, 0, 1, 1], [], []>} : vector<8x32xf32>, vector<32x32xf32>, vector<8x32xf32> -> vector<8x32xf32>
    %c0_4 = arith.constant 0 : index
    %c0_5 = arith.constant 0 : index
    %4 = vector.load %arg4[%c0_4, %c0_5] : memref<32x32xf32, #tpu.memory_space<vmem>>, vector<32x32xf32>
    %cst_6 = arith.constant dense<0.000000e+00> : vector<8x32xf32>
    %5 = tpu.matmul %1, %4, %cst_6 {dimension_numbers = #tpu.dot_dimension_numbers<[1], [0], [0], [1], [0, 0, 1, 1], [], []>} : vector<8x32xf32>, vector<32x32xf32>, vector<8x32xf32> -> vector<8x32xf32>
    %c0_7 = arith.constant 0 : index
    %c0_8 = arith.constant 0 : index
    %6 = vector.load %arg5[%c0_7, %c0_8] : memref<32x32xf32, #tpu.memory_space<vmem>>, vector<32x32xf32>
    %cst_9 = arith.constant dense<0.000000e+00> : vector<8x32xf32>
    %7 = tpu.matmul %1, %6, %cst_9 {dimension_numbers = #tpu.dot_dimension_numbers<[1], [0], [0], [1], [0, 0, 1, 1], [], []>} : vector<8x32xf32>, vector<32x32xf32>, vector<8x32xf32> -> vector<8x32xf32>
    %cst_10 = arith.constant 0.353553385 : f32
    %8 = vector.broadcast %cst_10 : f32 to vector<8x32xf32>
    %9 = arith.mulf %3, %8 : vector<8x32xf32>
    %c0_11 = arith.constant 0 : index
    %c0_12 = arith.constant 0 : index
    %c0_13 = arith.constant 0 : index
    %10 = vector.load %arg6[%c0_11, %c0_12, %c0_13] : memref<1x8x32xf32, #tpu.memory_space<vmem>>, vector<1x8x32xf32>
    %11 = vector.shape_cast %10 : vector<1x8x32xf32> to vector<8x32xf32>
    %12 = vector.shape_cast %9 : vector<8x32xf32> to vector<1x8x32xf32>
    tpu.vector_store %arg6[%c0_11, %c0_12, %c0_13], %12 {strides = array<i32>} : memref<1x8x32xf32, #tpu.memory_space<vmem>>, vector<1x8x32xf32>,
    %c0_14 = arith.constant 0 : index
    %c0_15 = arith.constant 0 : index
    %c0_16 = arith.constant 0 : index
    %13 = vector.load %arg7[%c0_14, %c0_15, %c0_16] : memref<1x8x32xf32, #tpu.memory_space<vmem>>, vector<1x8x32xf32>
    %14 = vector.shape_cast %13 : vector<1x8x32xf32> to vector<8x32xf32>
    %15 = vector.shape_cast %5 : vector<8x32xf32> to vector<1x8x32xf32>
    tpu.vector_store %arg7[%c0_14, %c0_15, %c0_16], %15 {strides = array<i32>} : memref<1x8x32xf32, #tpu.memory_space<vmem>>, vector<1x8x32xf32>,
    %c0_17 = arith.constant 0 : index
    %c0_18 = arith.constant 0 : index
    %c0_19 = arith.constant 0 : index
    %16 = vector.load %arg8[%c0_17, %c0_18, %c0_19] : memref<1x8x32xf32, #tpu.memory_space<vmem>>, vector<1x8x32xf32>
    %17 = vector.shape_cast %16 : vector<1x8x32xf32> to vector<8x32xf32>
    %18 = vector.shape_cast %7 : vector<8x32xf32> to vector<1x8x32xf32>
    tpu.vector_store %arg8[%c0_17, %c0_18, %c0_19], %18 {strides = array<i32>} : memref<1x8x32xf32, #tpu.memory_space<vmem>>, vector<1x8x32xf32>,
    return
  }
  func.func @transform_0(%arg0: i32, %arg1: i32) -> (i32, i32, i32) {
    %c0_i32 = arith.constant 0 : i32
    %c0_i32_0 = arith.constant 0 : i32
    return %arg0, %arg1, %c0_i32 : i32, i32, i32
  }
  func.func @transform_1(%arg0: i32, %arg1: i32) -> (i32, i32) {
    %c0_i32 = arith.constant 0 : i32
    %c0_i32_0 = arith.constant 0 : i32
    %c0_i32_1 = arith.constant 0 : i32
    return %c0_i32, %c0_i32_0 : i32, i32
  }
  func.func @transform_2(%arg0: i32, %arg1: i32) -> (i32, i32) {
    %c0_i32 = arith.constant 0 : i32
    %c0_i32_0 = arith.constant 0 : i32
    %c0_i32_1 = arith.constant 0 : i32
    return %c0_i32, %c0_i32_0 : i32, i32
  }
  func.func @transform_3(%arg0: i32, %arg1: i32) -> (i32, i32) {
    %c0_i32 = arith.constant 0 : i32
    %c0_i32_0 = arith.constant 0 : i32
    %c0_i32_1 = arith.constant 0 : i32
    return %c0_i32, %c0_i32_0 : i32, i32
  }
  func.func @transform_4(%arg0: i32, %arg1: i32) -> (i32, i32, i32) {
    %c0_i32 = arith.constant 0 : i32
    %c0_i32_0 = arith.constant 0 : i32
    return %arg0, %arg1, %c0_i32 : i32, i32, i32
  }
  func.func @transform_5(%arg0: i32, %arg1: i32) -> (i32, i32, i32) {
    %c0_i32 = arith.constant 0 : i32
    %c0_i32_0 = arith.constant 0 : i32
    return %arg0, %arg1, %c0_i32 : i32, i32, i32
  }
  func.func @transform_6(%arg0: i32, %arg1: i32) -> (i32, i32, i32) {
    %c0_i32 = arith.constant 0 : i32
    %c0_i32_0 = arith.constant 0 : i32
    return %arg0, %arg1, %c0_i32 : i32, i32, i32
  }
}

</mosaic_0001>

<bundles_post_ra>
// kernel: tpu_custom_call.1
= control target key start
LH: loop header
LB: loop body
LE: loop exit
PB: predicated region body
PF: predicated region fallthrough
CT: control target
= control target key end

     0   :  { %s1363_s0 = inlined_call_operand.hbm [shape: f32[2,8,32], index: 0, kind: input, shape index: {}]   ;;  %s1364_s1 = inlined_call_operand.hbm [shape: f32[32,32], index: 1, kind: input, shape index: {}]   ;;  %s1365_s2 = inlined_call_operand.hbm [shape: f32[32,32], index: 2, kind: input, shape index: {}]   ;;  %s1366_s3 = inlined_call_operand.hbm [shape: f32[32,32], index: 3, kind: input, shape index: {}]   ;;  %s1367_s4 = inlined_call_operand.hbm [shape: f32[2,8,32], index: 4, kind: output, shape index: {0}]   ;;  %s1368_s5 = inlined_call_operand.hbm [shape: f32[2,8,32], index: 5, kind: output, shape index: {1}]   ;;  %s1369_s6 = inlined_call_operand.hbm [shape: f32[2,8,32], index: 6, kind: output, shape index: {2}]  }
   0x1   :  { %1373 = sst [smem:[#allocation20_spill]] %s1363_s0 }
   0x2   :  { %1374 = sst [smem:[#allocation21_spill]] %s1364_s1 }
   0x3   :  { %1375 = sst [smem:[#allocation22_spill]] %s1365_s2 }
   0x4   :  { %12 = vsyncpa [#allocation3], 0 }
   0x5   :  { %14 = vsyncpa [#allocation3 + $0x1], 0 }
   0x6   :  { %15 = vsyncpa [#allocation6], 0 }
   0x7   :  { %16 = vsyncpa [#allocation9], 0 }
   0x8   :  { %17 = vsyncpa [#allocation4], 0 }
   0x9   :  { %19 = vsyncpa [#allocation4 + $0x1], 0 }
   0xa   :  { %20 = vsyncpa [#allocation12], 0 }
   0xb   :  { %22 = vsyncpa [#allocation12 + $0x1], 0  ;;  %s1115_s21 = smov 0   ;;  %s1117_s22 = smov 0  }
   0xc   :  { %s1119_s23 = smov 0   ;;  %s1121_s24 = smov 0  }
   0xd   :  { %s1123_s25 = smov 0   ;;  %s1125_s26 = smov 0  }
   0xe LB: > { %s1146_s27 = sadd.s32 4294967295, %s1073_s26   ;;  %p672_p0 = scmp.ge.s32.totalorder %s1073_s26, 1  ;;  %s1073_s26 = sphi %s1125_s26, %s28_s26   ;;  %s1069_s25 = sphi %s1123_s25, %s1394_s25   ;;  %s1065_s24 = sphi %s1121_s24, %s1393_s24   ;;  %s1061_s23 = sphi %s1119_s23, %s1392_s23   ;;  %s1057_s22 = sphi %s1117_s22, %s1391_s22   ;;  %s1053_s21 = sphi %s1115_s21, %s1390_s21  }
   0xf   : > { %p63_p1 = scmp.eq.s32.totalorder %s1146_s27, 0  ;;  %p220_p2 = scmp.lt.s32.totalorder %s1073_s26, 3 }
  0x10   : > { %s1376_s1 = sld [smem:[#allocation21_spill]]  ;;  %s1075_s8 = smov [#allocation5]  }
  0x11   : > { %p1154_p3 = pnand %p672_p0, %p220_p2  ;;  %s233_s9 = sshll.u32 %s1075_s8, 4  ;;  %s234_s9 = int_to_ptr.vmem [resolvable:$true] %s233_s9 }
  0x12   : > { %p676_p6 = scmp.ge.s32.totalorder %s1073_s26, 2  ;;  %s1379_s2 = sld [smem:[#allocation22_spill]] }
  0x13   : > { %p718_p4 = pneg %p1154_p3  ;;  %s1076_s14 = smov 128  }
  0x14   : > { %s1077_s15 = smov 8   ;;  %s1078_s16 = smov [#allocation7]  }
  0x15   : > { %p1162_p5 = pnand %p718_p4, %p63_p1  ;;  %s247_s17 = sshll.u32 %s1078_s16, 4  ;;  %s248_s17 = int_to_ptr.vmem [resolvable:$true] %s247_s17 }
  0x16   : > { %s231_s30 = sshll.u32 %s1376_s1, 4  ;;  %s259_s20 = sshll.u32 %s1366_s3, 4  ;;  %s232_s30 = int_to_ptr.hbm [resolvable:$true] %s231_s30  ;;  %s260_s20 = int_to_ptr.hbm [resolvable:$true] %s259_s20 }
  0x17   : > { %721 = dma.hbm_to_vmem [thread:$0]  (!%p1162_p5), %s232_s30, 512, %s234_s9, [#allocation6], %s1076_s14, %s1076_s14, %s1077_s15  }
  0x18   : > { %s245_s13 = sshll.u32 %s1379_s2, 4  ;;  %s1079_s28 = smov [#allocation8]   ;;  %s246_s13 = int_to_ptr.hbm [resolvable:$true] %s245_s13 }
  0x19   : > { %724 = dma.hbm_to_vmem [thread:$0]  (!%p1162_p5), %s246_s13, 512, %s248_s17, [#allocation6], %s1076_s14, %s1076_s14, %s1077_s15  }
  0x1a   : > { %s261_s29 = sshll.u32 %s1079_s28, 4  ;;  %s1370_s30 = sadd.s32 4294967294, %s1073_s26   ;;  %s262_s29 = int_to_ptr.vmem [resolvable:$true] %s261_s29 }
  0x1b   : > { %727 = dma.hbm_to_vmem [thread:$0]  (!%p1162_p5), %s260_s20, 512, %s262_s29, [#allocation9], %s1076_s14, %s1076_s14, %s1077_s15  }
  0x1c   : > { %s40_s8 = sadd.s32 1, %s1069_s25  ;;  %s49_s9 = sadd.s32 1, %s1061_s23 }
  0x1d   : > { %p42_p7 = scmp.ge.s32.totalorder %s40_s8, 2  ;;  %p56_p8 = scmp.ne.s32.totalorder %s1061_s23, %s1057_s22 }
  0x1e   : > { %p57_p9 = scmp.eq.s32.totalorder %s1073_s26, 0  ;;  %p62_p10 = scmp.ne.s32.totalorder %s1057_s22, %s1053_s21 }
  0x1f   : > { %s1396_s8 = smov (%p42_p7, %s40_s8), 0  ;;  %p151_p13 = scmp.eq.s32.totalorder %s1146_s27, 1 }
  0x20   : > { %p1189_p11 = por %p57_p9, %p56_p8  ;;  %p1195_p12 = por %p63_p1, %p62_p10 }
  0x21   : > { %s44_s12 = ssub.s32 %s1069_s25, %s1396_s8  ;;  %p157_p2 = scmp.eq.s32.totalorder %s1370_s30, 1 }
  0x22   : > { %p47_p0 = scmp.eq.s32.totalorder %s44_s12, 0  ;;  %p1204_p4 = por %p151_p13, %p56_p8 }
  0x23   : > { %p745_p5 = scmp.lt.s32.totalorder %s1073_s26, 2  ;;  %p1212_p7 = por %p157_p2, %p62_p10 }
  0x24   : > { %s1210_s14 = scalar_select %p47_p0, %s1061_s23, %s49_s9  }
  0x25   : > { %s275_s16 = sand.u32 1, %s1061_s23   ;;  %s678_s18 = sshll.u32 %s1069_s25, 3 }
  0x26   : > { %s677_s17 = sshll.u32 %s275_s16, 3  ;;  %s1384_s0 = sld [smem:[#allocation20_spill]] }
  0x27   : > { %s279_s29 = scalar_lea.vmem [#allocation2], %s677_s17  ;;  %p729_p8 = pnand %p745_p5, %p1189_p11 }
  0x28   : > { %s288_s12 = sshll.u32 %s279_s29, 4  ;;  %s276_s9 = scalar_lea.sflag [#allocation3], %s275_s16  ;;  %s289_s12 = int_to_ptr.vmem [resolvable:$true] %s288_s12 }
  0x2a   : > { %297 = sbr.rel (%p1154_p3) target bundleno = 219 (0xdb), region = 36 }
  0x2c   : > { %s284_s28 = scalar_lea.hbm %s1384_s0, %s678_s18 }
  0x2d   : > { %s286_s30 = sshll.u32 %s284_s28, 4  ;;  %s287_s30 = int_to_ptr.hbm [resolvable:$true] %s286_s30 }
  0x2e   : > { %731 = dma.hbm_to_vmem [thread:$0]  (!%p729_p8), %s287_s30, 128, %s289_s12, %s276_s9  }
  0x2f   : > { %s1226_s1 = sand.u32 1, %s1057_s22  }
  0x30   : > { %s1229_s19 = sshll.u32 %s1226_s1, 3  ;;  %s300_s17 = scalar_lea.sflag [#allocation3], %s1226_s1 }
  0x31   : > { %s303_s18 = scalar_lea.vmem [#allocation2], %s1229_s19 }
  0x32   : > { %1032 = dma.done.wait (%p1195_p12), %s300_s17, 128  }
  0x33   : > { %1034 = vsyncadd (%p1195_p12), %s300_s17, 4294967168 }
  0x34   : > { %1036 = dma.done.wait (%p63_p1), [#allocation6], 1024  }
  0x35   : > { %1038 = vsyncadd (%p63_p1), [#allocation6], 4294966272 }
  0x36   : > { %1040 = dma.done.wait (%p63_p1), [#allocation9], 512  }
  0x37   : > { %1042 = vsyncadd (%p63_p1), [#allocation9], 4294966784  ;;  %v414_v0 = vld [vmem:[#allocation8 + $0x18] sm:$0xff]  ;;  %v413_v1 = vld [vmem:[#allocation8 + $0x10] sm:$0xff]  ;;  %vm363_vm0 = vcmask 261120   ;;  %s693_s7 = sshll.u32 %s1065_s24, 3 }
  0x38   : > { %v362_v2 = vld [vmem:[#allocation5 + $0x18] sm:$0xff]  ;;  %427 = vmatpush.msra.mxu2 %v414_v0  ;;  %v361_v4 = vld [vmem:[#allocation5 + $0x10] sm:$0xff]  ;;  %v412_v5 = vld [vmem:[#allocation8 + $0x8] sm:$0xff]  ;;  %s476_s10 = scalar_lea.hbm %s1368_s5, %s693_s7  ;;  %s444_s16 = sand.u32 1, %s1146_s27  }
  0x39   : > { %379 = vmatpush.msra.mxu0 %v362_v2  ;;  %v390_v3 = vld [vmem:[#allocation7 + $0x18] sm:$0xff]  ;;  %v389_v6 = vld [vmem:[#allocation7 + $0x10] sm:$0xff]  ;;  %v360_v7 = vld [vmem:[#allocation5 + $0x8] sm:$0xff]  ;;  %s350_s20 = scalar_lea.vmem [#allocation11], %s1229_s19  ;;  %s461_s9 = scalar_lea.hbm %s1367_s4, %s693_s7 }
  0x3a   : > { %403 = vmatpush.msra.mxu1 %v390_v3  ;;  %428 = vmatpush.msra.mxu2 %v413_v1  ;;  %v388_v8 = vld [vmem:[#allocation7 + $0x8] sm:$0xff]  ;;  %v411_v9 = vld [vmem:[#allocation8] sm:$0xff]  ;;  %v358_v11 = vld [vmem:[%s303_s18] sm:$0xff]  ;;  %s1254_s28 = sshll.u32 %s350_s20, 4  ;;  %s1371_s17 = scalar_lea.vmem [#allocation13], %s1229_s19  ;;  %s479_s28 = int_to_ptr.vmem [resolvable:$true] %s1254_s28 }
  0x3b   : > { %380 = vmatpush.msra.mxu0 %v361_v4  ;;  %v359_v10 = vld [vmem:[#allocation5] sm:$0xff]  ;;  %s1262_s18 = sshll.u32 %s1371_s17, 4  ;;  %s491_s24 = scalar_lea.hbm %s1369_s6, %s693_s7  ;;  %s494_s18 = int_to_ptr.vmem [resolvable:$true] %s1262_s18 }
  0x3c   : > { %404 = vmatpush.msra.mxu1 %v389_v6  ;;  %429 = vmatpush.msra.mxu2 %v412_v5  ;;  %v387_v12 = vld [vmem:[#allocation7] sm:$0xff]  ;;  %s1267_s30 = sshll.u32 %s476_s10, 4  ;;  %s343_s27 = scalar_lea.vmem [#allocation10], %s1229_s19  ;;  %s481_s30 = int_to_ptr.hbm [resolvable:$true] %s1267_s30 }
  0x3d   : > { %381 = vmatpush.msra.mxu0 %v360_v7  ;;  %s1272_s11 = sshll.u32 %s343_s27, 4  ;;  %s1274_s29 = sshll.u32 %s461_s9, 4  ;;  %s466_s29 = int_to_ptr.hbm [resolvable:$true] %s1274_s29 }
  0x3e   : > { %405 = vmatpush.msra.mxu1 %v388_v8  ;;  %430 = vmatpush.msra.mxu2 %v411_v9  ;;  %1385 = sst [smem:[#allocation19_spill]] %s1272_s11  ;;  %s1277_s12 = sshll.u32 %s491_s24, 4  ;;  %s496_s12 = int_to_ptr.hbm [resolvable:$true] %s1277_s12 }
  0x3f   : > { %382 = vmatpush.msra.mxu0 %v359_v10  ;;  %689 = vmatmul.msk.f32.vlgmr.msra.gmra.mxu2 %vm363_vm0, %v358_v11  ;;  %s1285_s0 = scalar_lea.sflag [#allocation12], %s444_s16  ;;  %s937_s2 = sshra.s32 %s481_s30, 4  ;;  %s938_s2 = int_to_ptr.hbm [resolvable:$true] %s937_s2 }
  0x40   : > { %687 = vmatmul.msk.f32.vlgmr.msra.gmra.mxu0 %vm363_vm0, %v358_v11  ;;  %406 = vmatpush.msra.mxu1 %v387_v12  ;;  %s939_s7 = scalar_lea.hbm %s938_s2, 8  ;;  %s943_s24 = scalar_lea.hbm %s1368_s5, 16 }
  0x41   : > { %688 = vmatmul.msk.f32.vlgmr.msra.gmra.mxu1 %vm363_vm0, %v358_v11  ;;  %p940_p1 = scmp.ne.s32.totalorder %s938_s2, %s939_s7  ;;  %p944_p10 = scmp.lt.s32.totalorder %s938_s2, %s1368_s5 }
  0x42   : > { %p945_p11 = scmp.lt.s32.totalorder %s943_s24, %s939_s7 }
  0x43   : > { %p941_p3 = pnand %p940_p1, %p1204_p4 }
  0x44   : > { %p946_p12 = por %p945_p11, %p944_p10 }
  0x45   : > { %p942_p9 = pneg %p941_p3 }
  0x47   : > { %p947_p13 = pnand %p946_p12, %p942_p9 }
  0xbd   : > { %v384_v13 = vpop.f32.mrf.mxu0 }
  0xbe   : > { %v435_v14 = vmul.f32 0.35355338, %v384_v13  ;;  %v408_v15 = vpop.f32.mrf.mxu1 }
  0xbf   : > { %437 = vst.msk [vmem:[%s350_s20] sm:$0xff] %vm363_vm0, %v408_v15 }
  0xc0   : > { %950 = shalt.err (!%p947_p13)
}
  0xc1   : > { %713 = dma.vmem_to_hbm [thread:$0]  (%p1204_p4), %s479_s28, 128, %s481_s30, %s1285_s0   ;;  %436 = vst.msk [vmem:[%s343_s27] sm:$0xff] %vm363_vm0, %v435_v14 }
  0xc2   : > { %s440_s16 = scalar_lea.sflag [#allocation4], %s1226_s1  ;;  %s965_s20 = sshra.s32 %s466_s29, 4  ;;  %s966_s20 = int_to_ptr.hbm [resolvable:$true] %s965_s20 }
  0xc3   : > { %s967_s17 = scalar_lea.hbm %s966_s20, 8  ;;  %s971_s7 = scalar_lea.hbm %s1367_s4, 16 }
  0xc4   : > { %p968_p0 = scmp.ne.s32.totalorder %s966_s20, %s967_s17  ;;  %p972_p8 = scmp.lt.s32.totalorder %s966_s20, %s1367_s4 }
  0xc5   : > { %p973_p1 = scmp.lt.s32.totalorder %s971_s7, %s967_s17 }
  0xc6   : > { %p969_p2 = pnand %p968_p0, %p1204_p4 }
  0xc7   : > { %p974_p3 = por %p973_p1, %p972_p8 }
  0xc8   : > { %p970_p5 = pneg %p969_p2 }
  0xca   : > { %p975_p9 = pnand %p974_p3, %p970_p5 }
  0xcc   : > { %978 = shalt.err (!%p975_p9)
}
  0xcd   : > { %s1386_s1 = sld [smem:[#allocation19_spill]]  ;;  %v432_v16 = vpop.f32.mrf.mxu2  ;;  %s1388_s30 = scalar_lea.vmem [#allocation13], %s1229_s19 }
  0xce   : > { %438 = vst.msk [vmem:[%s1388_s30] sm:$0xff] %vm363_vm0, %v432_v16  ;;  %s993_s27 = sshra.s32 %s496_s12, 4  ;;  %s999_s11 = scalar_lea.hbm %s1369_s6, 16  ;;  %s994_s27 = int_to_ptr.hbm [resolvable:$true] %s993_s27 }
  0xcf   : > { %s995_s24 = scalar_lea.hbm %s994_s27, 8  ;;  %p1000_p13 = scmp.lt.s32.totalorder %s994_s27, %s1369_s6 }
  0xd0   : > { %p996_p10 = scmp.ne.s32.totalorder %s994_s27, %s995_s24  ;;  %p1001_p0 = scmp.lt.s32.totalorder %s999_s11, %s995_s24 }
  0xd2   : > { %p997_p11 = pnand %p996_p10, %p1204_p4  ;;  %p1002_p2 = por %p1001_p0, %p1000_p13 }
  0xd3   : > { %s1387_s28 = int_to_ptr.vmem [resolvable:$true] %s1386_s1 }
  0xd4   : > { %712 = dma.vmem_to_hbm [thread:$0]  (%p1204_p4), %s1387_s28, 128, %s466_s29, %s440_s16  }
  0xd5   : > { %p998_p12 = pneg %p997_p11 }
  0xd7   : > { %p1003_p5 = pnand %p1002_p2, %p998_p12 }
  0xd9   : > { %1006 = shalt.err (!%p1003_p5)
}
  0xda   : > { %714 = dma.vmem_to_hbm [thread:$0]  (%p1204_p4), %s494_s18, 128, %s496_s12, %s1285_s0  }
  0xdb PF: > { %s507_s19 = sand.u32 1, %s1053_s21   ;;  %p733_p8 = pnand %p676_p6, %p1212_p7 }
  0xdc   : > { %s508_s29 = scalar_lea.sflag [#allocation4], %s507_s19 }
  0xdd   : > { %p734_p1 = pneg %p733_p8 }
  0xdf   : > { %1044 = dma.done.wait (%p734_p1), %s508_s29, 128  }
  0xe0   : > { %1046 = vsyncadd (%p734_p1), %s508_s29, 4294967168  ;;  %s1389_s13 = sadd.s32 4294967294, %s1073_s26  }
  0xe1   : > { %s517_s16 = sand.u32 1, %s1389_s13  }
  0xe2   : > { %s518_s10 = scalar_lea.sflag [#allocation12], %s517_s16 }
  0xe3   : > { %1048 = dma.done.wait (%p734_p1), %s518_s10, 256  }
  0xe4   : > { %1050 = vsyncadd (%p734_p1), %s518_s10, 4294967040  ;;  %s28_s26 = sadd.s32 1, %s1073_s26   ;;  %s1390_s21 = smov %s1057_s22 }
  0xe5   : > { %p25_p4 = scmp.ge.s32.totalorder %s28_s26, 4   ;;  %s1391_s22 = smov %s1061_s23 }
  0xe6   : > { %s1392_s23 = smov %s1210_s14  ;;  %s1393_s24 = smov %s1069_s25 }
  0xe7   : > { %s1394_s25 = smov %s1396_s8  ;;  %27 = sbr.rel (!%p25_p4) target bundleno = 14 (0xe), region = 125 }
  0xec   :  { %534 = vsyncpa [#allocation3], 1 }
  0xed   :  { %536 = vsyncpa [#allocation3 + $0x1], 1 }
  0xee   :  { %537 = vsyncpa [#allocation6], 1 }
  0xef   :  { %538 = vsyncpa [#allocation9], 1 }
  0xf0   :  { %539 = vsyncpa [#allocation4], 1 }
  0xf1   :  { %541 = vsyncpa [#allocation4 + $0x1], 1 }
  0xf2   :  { %542 = vsyncpa [#allocation12], 1 }
  0xf3   :  { %544 = vsyncpa [#allocation12 + $0x1], 1 }

</bundles_post_ra>
